<compile_context>
chip_gen: v7x
topology: tpu7x:2x2x1
jax: 0.10.0
libtpu: 0.0.40
codegen_flags: <defaults>
</compile_context>

<pallas_src>
import functools

import jax
import jax.numpy as jnp
from jax.experimental import pallas as pl
from jax.experimental.pallas import tpu as pltpu


def _var_kernel(var_ref, out_ref, *, fn):
    # Elementwise transform of the variance tile (VPU work, fully hidden under
    # the HBM-bound stream).
    out_ref[...] = fn(var_ref[...])


def _is_fusable_elementwise(fn, shape, dtype):
    """True if fn traces under JAX and preserves shape & dtype.

    NOTE: fusion additionally assumes fn is *elementwise* (as every ADF
    keep_variance_fn is: a clamp or `x + min_variance`), because the kernel
    applies it to reshaped 2D tiles of the flattened variance.
    """
    try:
        out = jax.eval_shape(fn, jax.ShapeDtypeStruct(shape, dtype))
    except Exception:
        return False
    return (isinstance(out, jax.ShapeDtypeStruct)
            and out.shape == shape and out.dtype == dtype)


def _apply_variance_fn_pallas(var, fn):
    """Stream `var` through a Pallas kernel applying elementwise `fn`."""
    orig_shape = var.shape
    dtype = var.dtype
    total = int(var.size)
    itemsize = jnp.dtype(dtype).itemsize
    # Minimum sublane multiple per dtype: 8 (f32), 16 (bf16), 32 (int8/fp8).
    sub = max(8, 32 // itemsize)

    # Lane-dense width that divides the element count -> no pad / slice passes.
    cols = None
    for c in (4096, 2048, 1024, 512, 256, 128):
        if total % c == 0:
            cols = c
            break

    if cols is not None:
        rows = total // cols
        v2 = var.reshape(rows, cols)
        padded_tail = False
    else:
        # TODO(synk): ragged totals (not a multiple of 128) still take one
        # jnp.pad pass + a post-slice; only hit for tiny/odd shapes.
        cols = 128
        rows = pl.cdiv(total, cols)
        v2 = jnp.pad(var.reshape(-1), (0, rows * cols - total)).reshape(rows, cols)
        padded_tail = True

    # ~4 MiB per block per array: 2 arrays x 2 buffers x 4 MiB = 16 MiB VMEM.
    target_rows = max(sub, ((4 << 20) // (cols * itemsize)) // sub * sub)

    if rows <= target_rows:
        block_rows = rows          # single block == full array (no (8,128) rule)
    else:
        block_rows = target_rows   # multiple of `sub`; cdiv grid masks the tail

    grid = (pl.cdiv(rows, block_rows),)
    spec = pl.BlockSpec((block_rows, cols), lambda i: (i, 0))

    out2 = pl.pallas_call(
        functools.partial(_var_kernel, fn=fn),
        grid=grid,
        in_specs=[spec],
        out_specs=spec,
        out_shape=jax.ShapeDtypeStruct((rows, cols), dtype),
        compiler_params=pltpu.CompilerParams(
            # Row-tile axis is embarrassingly parallel -> shards across the two
            # TensorCores on v7x; no-op on v5e/v6e (single TC).
            dimension_semantics=("parallel",),
            vmem_limit_bytes=32 * 1024 * 1024,
        ),
    )(v2)

    if padded_tail:
        out2 = out2.reshape(-1)[:total]
    return out2.reshape(orig_shape)


def adf_dropout(inputs_mean, inputs_variance, keep_variance_fn=None):
    """Pallas implementation of adf.Dropout.forward.

    Eval-mode semantics: z = ones_like(mean), so
      outputs_mean     = inputs_mean                         (exact identity)
      outputs_variance = keep_variance_fn(inputs_variance)   (or identity)
    """
    assert inputs_mean.shape == inputs_variance.shape

    outputs_mean = inputs_mean          # identity: zero HBM traffic, no copy

    if keep_variance_fn is None:
        return outputs_mean, inputs_variance   # full identity: no kernel launch

    if _is_fusable_elementwise(keep_variance_fn, inputs_variance.shape,
                               inputs_variance.dtype):
        outputs_variance = _apply_variance_fn_pallas(inputs_variance,
                                                     keep_variance_fn)
    else:
        # TODO(synk): non-jnp-composable / shape-or-dtype-changing
        # keep_variance_fn cannot be fused; applied as a plain JAX pass.
        outputs_variance = keep_variance_fn(inputs_variance)

    return outputs_mean, outputs_variance


if __name__ == "__main__":
    key = jax.random.PRNGKey(0)
    k1, k2 = jax.random.split(key)
    # Small NCHW shapes consistent with the ADF conv pipeline.
    x_mean = jax.random.normal(k1, (2, 4, 16, 16), dtype=jnp.float32)
    x_var = jax.nn.softplus(jax.random.normal(k2, (2, 4, 16, 16),
                                              dtype=jnp.float32))

    # 1) Default path (keep_variance_fn=None): exact identity, no kernel launch.
    out_mean, out_var = adf_dropout(x_mean, x_var)
    jax.block_until_ready((out_mean, out_var))
    assert out_mean.shape == x_mean.shape and out_var.shape == x_var.shape
    assert jnp.array_equal(out_mean, x_mean)
    assert jnp.array_equal(out_var, x_var)

    # 2) Fused keep_variance_fn path (typical ADF min-variance clamp) ->
    #    runs the Pallas kernel once over the variance only.
    min_var = 5e-1
    keep_fn = lambda v: jnp.maximum(v, min_var)
    out_mean_c, out_var_c = adf_dropout(x_mean, x_var, keep_variance_fn=keep_fn)
    jax.block_until_ready((out_mean_c, out_var_c))
    assert jnp.array_equal(out_mean_c, x_mean)
    assert jnp.allclose(out_var_c, jnp.maximum(x_var, min_var))

    # 3) Ragged-total bf16 input exercises the padding fallback + dtype-aware
    #    sublane rounding (still a single full-array block).
    k3, k4 = jax.random.split(k1)
    y_mean = jax.random.normal(k3, (3, 5, 7), dtype=jnp.bfloat16)
    y_var = jax.nn.softplus(jax.random.normal(k4, (3, 5, 7), dtype=jnp.bfloat16))
    keep_fn_bf16 = lambda v: v + jnp.asarray(1e-2, v.dtype)
    out_mean_r, out_var_r = adf_dropout(y_mean, y_var,
                                        keep_variance_fn=keep_fn_bf16)
    jax.block_until_ready((out_mean_r, out_var_r))
    assert jnp.array_equal(out_mean_r, y_mean)
    assert jnp.allclose(out_var_r.astype(jnp.float32),
                        (y_var + jnp.asarray(1e-2, y_var.dtype)).astype(jnp.float32))

    print("KERNEL_OK")
</pallas_src>

<mosaic_0001>
module attributes {stable_mosaic.version = 11 : i64} {
  func.func @_var_kernel(%arg0: i32, %arg1: memref<1x2048xf32, #tpu.memory_space<vmem>>, %arg2: memref<1x2048xf32, #tpu.memory_space<vmem>>) attributes {dimension_semantics = [#tpu.dimension_semantics<parallel>], iteration_bounds = array<i64: 1>, scalar_prefetch = 0 : i64, scratch_operands = 0 : i64, tpu.core_type = #tpu.core_type<tc>, window_params = [{transform_indices = @transform_0, window_bounds = array<i64: 1, 2048>}, {transform_indices = @transform_1, window_bounds = array<i64: 1, 2048>}]} {
    %c0 = arith.constant 0 : index
    %c0_0 = arith.constant 0 : index
    %0 = vector.load %arg1[%c0, %c0_0] : memref<1x2048xf32, #tpu.memory_space<vmem>>, vector<1x2048xf32>
    %cst = arith.constant 5.000000e-01 : f32
    %1 = vector.broadcast %cst : f32 to vector<1x2048xf32>
    %2 = arith.maximumf %0, %1 : vector<1x2048xf32>
    %c0_1 = arith.constant 0 : index
    %c0_2 = arith.constant 0 : index
    %3 = vector.load %arg2[%c0_1, %c0_2] : memref<1x2048xf32, #tpu.memory_space<vmem>>, vector<1x2048xf32>
    tpu.vector_store %arg2[%c0_1, %c0_2], %2 {strides = array<i32>} : memref<1x2048xf32, #tpu.memory_space<vmem>>, vector<1x2048xf32>,
    return
  }
  func.func @transform_0(%arg0: i32) -> (i32, i32) {
    %c0_i32 = arith.constant 0 : i32
    %c0_i32_0 = arith.constant 0 : i32
    return %arg0, %c0_i32 : i32, i32
  }
  func.func @transform_1(%arg0: i32) -> (i32, i32) {
    %c0_i32 = arith.constant 0 : i32
    %c0_i32_0 = arith.constant 0 : i32
    return %arg0, %c0_i32 : i32, i32
  }
}

</mosaic_0001>

<bundles_post_ra>
// kernel: tpu_custom_call.1
= control target key start
LH: loop header
LB: loop body
LE: loop exit
PB: predicated region body
PF: predicated region fallthrough
CT: control target
= control target key end

     0   :  { %6 = vsyncpa [#allocation3], 0  ;;  %s128_s0 = inlined_call_operand.hbm [shape: f32[1,2048], index: 0, kind: input, shape index: {}]   ;;  %s129_s1 = inlined_call_operand.hbm [shape: f32[1,2048], index: 1, kind: output, shape index: {}]  }
   0x1   :  { %7 = vsyncpa [#allocation4], 0  ;;  %s92_s6 = smov [#allocation2]   ;;  %s44_s10 = scalar_lea.hbm %s128_s0, 256 }
   0x2   :  { %s14_s7 = sshll.u32 %s92_s6, 4  ;;  %p45_p0 = scmp.ne.s32.totalorder %s128_s0, %s44_s10  ;;  %s15_s7 = int_to_ptr.vmem [resolvable:$true] %s14_s7 }
   0x3   :  { %p48_p1 = scmp.lt.u32.totalorder %s44_s10, %s128_s0 }
   0x5   :  { %p50_p2 = pnand %p48_p1, %p45_p0 }
   0x7   :  { %53 = shalt.err (!%p50_p2)
}
   0x8   :  { %s54_s15 = scalar_lea.vmem %s15_s7, 256  ;;  %p59_p4 = scmp.lt.s32.totalorder %s15_s7, %s15_s7 }
   0x9   :  { %p55_p3 = scmp.ne.s32.totalorder %s15_s7, %s54_s15  ;;  %p60_p5 = scmp.lt.s32.totalorder %s54_s15, %s54_s15 }
   0xb   :  { %p61_p6 = por %p60_p5, %p59_p4 }
   0xd   :  { %p62_p7 = pnand %p61_p6, %p55_p3 }
   0xf   :  { %65 = shalt.err (!%p62_p7)
}
  0x10   :  { %17 = dma.hbm_to_vmem [thread:$0]  %s128_s0, 256, %s15_s7, [#allocation3]  }
  0x11   :  { %88 = dma.done.wait [#allocation3], 256  }
  0x12   :  { %89 = vsyncadd [#allocation3], 4294967040  ;;  %s93_s18 = smov [#allocation5]   ;;  %v21_v0 = vld [vmem:[#allocation2] sm:$0xff]  ;;  %v22_v1 = vld [vmem:[#allocation2 + $0x8] sm:$0xff] }
  0x13   :  { %s33_s19 = sshll.u32 %s93_s18, 4  ;;  %v23_v2 = vmax.f32 %v21_v0, 0.5  ;;  %v24_v3 = vmax.f32 %v22_v1, 0.5  ;;  %s34_s19 = int_to_ptr.vmem [resolvable:$true] %s33_s19 }
  0x14   :  { %s66_s20 = scalar_lea.vmem %s34_s19, 256  ;;  %p71_p9 = scmp.lt.s32.totalorder %s34_s19, %s34_s19 }
  0x15   :  { %25 = vst [vmem:[#allocation5] sm:$0xff] %v23_v2  ;;  %26 = vst [vmem:[#allocation5 + $0x8] sm:$0xff] %v24_v3  ;;  %p67_p8 = scmp.ne.s32.totalorder %s34_s19, %s66_s20  ;;  %p72_p10 = scmp.lt.s32.totalorder %s66_s20, %s66_s20 }
  0x17   :  { %p73_p11 = por %p72_p10, %p71_p9 }
  0x19   :  { %p74_p12 = pnand %p73_p11, %p67_p8 }
  0x1b   :  { %77 = shalt.err (!%p74_p12)
}
  0x1c   :  { %s78_s22 = scalar_lea.hbm %s129_s1, 256 }
  0x1d   :  { %p79_p13 = scmp.ne.s32.totalorder %s129_s1, %s78_s22  ;;  %p82_p0 = scmp.lt.u32.totalorder %s78_s22, %s129_s1 }
  0x1f   :  { %p84_p1 = pnand %p82_p0, %p79_p13 }
  0x21   :  { %87 = shalt.err (!%p84_p1)
}
  0x22   :  { %36 = dma.vmem_to_hbm [thread:$0]  %s34_s19, 256, %s129_s1, [#allocation4]  }
  0x23   :  { %90 = dma.done.wait [#allocation4], 256  }
  0x24   :  { %91 = vsyncadd [#allocation4], 4294967040 }
  0x25   :  { %40 = vsyncpa [#allocation3], 1 }
  0x26   :  { %41 = vsyncpa [#allocation4], 1 }

</bundles_post_ra>
